<compile_context>
chip_gen: v7x
topology: tpu7x:2x2x1
jax: 0.10.0
libtpu: 0.0.40
codegen_flags: <defaults>
</compile_context>

<pallas_src>
import functools

import jax
import jax.numpy as jnp
from jax.experimental import pallas as pl
from jax.experimental.pallas import tpu as pltpu


def _nll_partial_kernel(pred_ref, tgt_ref, num_ref, cnt_ref, col_num, col_cnt,
                        *, n_rows, tiles_per_core):
    # grid = (num_cores [parallel], tiles_per_core [arbitrary])
    j = pl.program_id(1)

    @pl.when(j == 0)
    def _():
        col_num[...] = jnp.zeros_like(col_num)
        col_cnt[...] = jnp.zeros_like(col_cnt)

    pred = pred_ref[...].astype(jnp.float32)   # (TN, C) log-probs (upcast if bf16)
    tgt = tgt_ref[...]                         # (TN, 1) int32 class indices

    tn, nc = pred.shape
    block_idx = pl.program_id(0) * tiles_per_core + j
    row0 = block_idx * tn

    rows = jax.lax.broadcasted_iota(jnp.int32, (tn, nc), 0) + row0
    classes = jax.lax.broadcasted_iota(jnp.int32, (tn, nc), 1)
    # one-hot of the target class, masked to valid rows (handles ragged N and
    # the clamped/duplicated tail block on the second core).
    onehot = (classes == tgt) & (rows < n_rows)

    # Per-class partials only; no per-tile lane reduction to a scalar and no
    # per-tile masked scalar store.  jnp.where (not multiply) so padded-row
    # garbage (possibly NaN/Inf) cannot leak in.
    col_num[...] += jnp.sum(jnp.where(onehot, pred, 0.0), axis=0, keepdims=True)
    col_cnt[...] += jnp.sum(onehot.astype(jnp.float32), axis=0, keepdims=True)

    @pl.when(j == pl.num_programs(1) - 1)
    def _():
        num_ref[0] = col_num[...]
        cnt_ref[0] = col_cnt[...]


def weighted_nll_loss(pred, target, weight, *, block_n=2048, num_cores=2):
    """pred: (N, C) float log-probs, target: (N,) int, weight: (C,) -> scalar f32.

    Matches F.nll_loss(pred, target, weight=weight, reduction='mean').
    NOTE: like PyTorch, an all-zero selected-weight sum yields 0/0 = NaN.
    Out-of-range targets contribute zero to numerator and denominator
    (ignore_index-like behaviour; no error is raised).
    """
    N, C = pred.shape

    # Tile height: as large as requested but clamped to the problem size and
    # rounded up to a sublane multiple of 8.  At bn=2048 the (bn, C) and
    # (bn, 1) tiles are each ~1 MiB in VMEM after 128-lane padding, ~4 MiB
    # double-buffered -> comfortably within scoped VMEM on v5e/v6e/v7x.
    bn = min(block_n, N)
    bn = max(8, ((bn + 7) // 8) * 8)

    tiles = pl.cdiv(N, bn)
    tiles_per_core = pl.cdiv(tiles, num_cores)
    last_block = tiles - 1

    if not jnp.issubdtype(pred.dtype, jnp.floating):
        pred = pred.astype(jnp.float32)
    target2d = target.reshape(N, 1).astype(jnp.int32)
    # TODO(synk): target is lane-padded to 128 lanes in VMEM (costs as much as
    # the pred tile); a lane-dense layout + in-kernel transpose would roughly
    # double the feasible block_n.

    def row_map(c, j):
        # Clamp so the DMA'd block index is always in range; fully out-of-range
        # blocks are masked to zero inside the kernel anyway.
        return (jnp.minimum(c * tiles_per_core + j, last_block), 0)

    def out_map(c, j):
        return (c, 0, 0)

    kernel = functools.partial(_nll_partial_kernel, n_rows=N,
                               tiles_per_core=tiles_per_core)

    num_parts, cnt_parts = pl.pallas_call(
        kernel,
        out_shape=(
            jax.ShapeDtypeStruct((num_cores, 1, C), jnp.float32),
            jax.ShapeDtypeStruct((num_cores, 1, C), jnp.float32),
        ),
        grid_spec=pltpu.PrefetchScalarGridSpec(
            num_scalar_prefetch=0,
            grid=(num_cores, tiles_per_core),
            in_specs=[
                pl.BlockSpec((bn, C), row_map),   # pred tile
                pl.BlockSpec((bn, 1), row_map),   # target tile
            ],
            out_specs=[
                pl.BlockSpec((1, 1, C), out_map),  # per-core col_num partial
                pl.BlockSpec((1, 1, C), out_map),  # per-core col_cnt partial
            ],
            scratch_shapes=[
                pltpu.VMEM((1, C), jnp.float32),   # per-class numerator partial
                pltpu.VMEM((1, C), jnp.float32),   # per-class count partial
            ],
        ),
        compiler_params=pltpu.CompilerParams(
            dimension_semantics=("parallel", "arbitrary"),
            vmem_limit_bytes=32 << 20,
        ),
        cost_estimate=pl.CostEstimate(
            flops=3 * N * C,
            transcendentals=0,
            bytes_accessed=N * C * pred.dtype.itemsize + N * 4
                           + 2 * num_cores * C * 4,
        ),
    )(pred, target2d)

    # Tiny C-length weighted combine (follows the review: combine per-core
    # partials with a trivial jnp reduction in the wrapper).
    w = weight.astype(jnp.float32)
    col_num = jnp.sum(num_parts, axis=(0, 1))   # (C,)
    col_cnt = jnp.sum(cnt_parts, axis=(0, 1))   # (C,)
    num = -jnp.dot(w, col_num)
    den = jnp.dot(w, col_cnt)
    return num / den


def get_loss_forward(pred, target, trans_feat, weight):
    # trans_feat is accepted for API parity with the PyTorch module but unused.
    del trans_feat
    return weighted_nll_loss(pred, target, weight)


def _reference(pred, target, weight):
    w_t = weight[target]
    picked = pred[jnp.arange(pred.shape[0]), target]
    return -jnp.sum(w_t * picked) / jnp.sum(w_t)


if __name__ == "__main__":
    key = jax.random.PRNGKey(0)
    k1, k2, k3, k4, k5, k6 = jax.random.split(key, 6)

    # ---- case 1: pointnet2-style flattened (batch*points, classes) ----------
    B, P, C = 2, 64, 13          # batch=2, 64 points, 13 semantic classes
    N = B * P                    # pointnet2 sem-seg flattens to (N, C)

    logits = jax.random.normal(k1, (N, C), dtype=jnp.float32)
    pred = jax.nn.log_softmax(logits, axis=-1)                    # (N, C)
    target = jax.random.randint(k2, (N,), 0, C, dtype=jnp.int32)  # (N,)
    weight = jax.random.uniform(k3, (C,), dtype=jnp.float32,
                                minval=0.5, maxval=2.0)           # (C,)
    trans_feat = jax.random.normal(k4, (B, 16, 16), dtype=jnp.float32)  # unused

    loss = get_loss_forward(pred, target, trans_feat, weight)
    loss = jax.block_until_ready(loss)
    ref = _reference(pred, target, weight)
    assert jnp.allclose(loss, ref, rtol=1e-5, atol=1e-6), (loss, ref)

    # ---- case 2: ragged N (not a multiple of the tile) exercises masking ----
    N2 = 100
    logits2 = jax.random.normal(k5, (N2, C), dtype=jnp.float32)
    pred2 = jax.nn.log_softmax(logits2, axis=-1)
    target2 = jax.random.randint(k6, (N2,), 0, C, dtype=jnp.int32)

    loss2 = weighted_nll_loss(pred2, target2, weight, block_n=64)
    loss2 = jax.block_until_ready(loss2)
    ref2 = _reference(pred2, target2, weight)
    assert jnp.allclose(loss2, ref2, rtol=1e-5, atol=1e-6), (loss2, ref2)

    print("KERNEL_OK")
</pallas_src>

<mosaic_0001>
module attributes {stable_mosaic.version = 11 : i64} {
  func.func @_nll_partial_kernel(%arg0: i32, %arg1: i32, %arg2: memref<128x13xf32, #tpu.memory_space<vmem>>, %arg3: memref<128x1xi32, #tpu.memory_space<vmem>>, %arg4: memref<1x1x13xf32, #tpu.memory_space<vmem>>, %arg5: memref<1x1x13xf32, #tpu.memory_space<vmem>>, %arg6: memref<1x13xf32, #tpu.memory_space<vmem>>, %arg7: memref<1x13xf32, #tpu.memory_space<vmem>>) attributes {dimension_semantics = [#tpu.dimension_semantics<parallel>, #tpu.dimension_semantics<arbitrary>], iteration_bounds = array<i64: 2, 1>, scalar_prefetch = 0 : i64, scratch_operands = 2 : i64, tpu.core_type = #tpu.core_type<tc>, window_params = [{transform_indices = @transform_0, window_bounds = array<i64: 128, 13>}, {transform_indices = @transform_1, window_bounds = array<i64: 128, 1>}, {transform_indices = @transform_2, window_bounds = array<i64: 1, 1, 13>}, {transform_indices = @transform_3, window_bounds = array<i64: 1, 1, 13>}]} {
    %c0_i32 = arith.constant 0 : i32
    %0 = arith.cmpi eq, %arg1, %c0_i32 : i32
    %1 = arith.extui %0 : i1 to i32
    %c0_i32_0 = arith.constant 0 : i32
    %2 = arith.cmpi ne, %1, %c0_i32_0 : i32
    scf.if %2 {
      %cst_17 = arith.constant 0.000000e+00 : f32
      %34 = vector.broadcast %cst_17 : f32 to vector<1x13xf32>
      %c0_18 = arith.constant 0 : index
      %c0_19 = arith.constant 0 : index
      %35 = vector.load %arg6[%c0_18, %c0_19] : memref<1x13xf32, #tpu.memory_space<vmem>>, vector<1x13xf32>
      tpu.vector_store %arg6[%c0_18, %c0_19], %34 {strides = array<i32>} : memref<1x13xf32, #tpu.memory_space<vmem>>, vector<1x13xf32>,
      %cst_20 = arith.constant 0.000000e+00 : f32
      %36 = vector.broadcast %cst_20 : f32 to vector<1x13xf32>
      %c0_21 = arith.constant 0 : index
      %c0_22 = arith.constant 0 : index
      %37 = vector.load %arg7[%c0_21, %c0_22] : memref<1x13xf32, #tpu.memory_space<vmem>>, vector<1x13xf32>
      tpu.vector_store %arg7[%c0_21, %c0_22], %36 {strides = array<i32>} : memref<1x13xf32, #tpu.memory_space<vmem>>, vector<1x13xf32>,
    } else {
    }
    %c0 = arith.constant 0 : index
    %c0_1 = arith.constant 0 : index
    %3 = vector.load %arg2[%c0, %c0_1] : memref<128x13xf32, #tpu.memory_space<vmem>>, vector<128x13xf32>
    %c0_2 = arith.constant 0 : index
    %c0_3 = arith.constant 0 : index
    %4 = vector.load %arg3[%c0_2, %c0_3] : memref<128x1xi32, #tpu.memory_space<vmem>>, vector<128x1xi32>
    %c1_i32 = arith.constant 1 : i32
    %5 = arith.muli %arg0, %c1_i32 : i32
    %6 = arith.addi %5, %arg1 : i32
    %c128_i32 = arith.constant 128 : i32
    %7 = arith.muli %6, %c128_i32 : i32
    %8 = tpu.iota {dimensions = array<i32: 0>} : vector<128x13xi32>
    %9 = vector.broadcast %7 : i32 to vector<128x13xi32>
    %10 = arith.addi %8, %9 : vector<128x13xi32>
    %11 = tpu.iota {dimensions = array<i32: 1>} : vector<128x13xi32>
    %12 = vector.broadcast %4 : vector<128x1xi32> to vector<128x13xi32>
    %13 = arith.cmpi eq, %11, %12 : vector<128x13xi32>
    %c128_i32_4 = arith.constant 128 : i32
    %14 = vector.broadcast %c128_i32_4 : i32 to vector<128x13xi32>
    %15 = arith.cmpi slt, %10, %14 : vector<128x13xi32>
    %16 = arith.andi %13, %15 : vector<128x13xi1>
    %c0_5 = arith.constant 0 : index
    %c0_6 = arith.constant 0 : index
    %17 = vector.load %arg6[%c0_5, %c0_6] : memref<1x13xf32, #tpu.memory_space<vmem>>, vector<1x13xf32>
    %cst = arith.constant 0.000000e+00 : f32
    %18 = vector.broadcast %cst : f32 to vector<128x13xf32>
    %19 = arith.select %16, %3, %18 : vector<128x13xi1>, vector<128x13xf32>
    %cst_7 = arith.constant dense<0.000000e+00> : vector<13xf32>
    %20 = vector.multi_reduction <add>, %19, %cst_7 [0] : vector<128x13xf32> to vector<13xf32>
    %21 = vector.shape_cast %20 : vector<13xf32> to vector<1x13xf32>
    %22 = arith.addf %17, %21 : vector<1x13xf32>
    %c0_8 = arith.constant 0 : index
    %c0_9 = arith.constant 0 : index
    %23 = vector.load %arg6[%c0_8, %c0_9] : memref<1x13xf32, #tpu.memory_space<vmem>>, vector<1x13xf32>
    tpu.vector_store %arg6[%c0_8, %c0_9], %22 {strides = array<i32>} : memref<1x13xf32, #tpu.memory_space<vmem>>, vector<1x13xf32>,
    %c0_10 = arith.constant 0 : index
    %c0_11 = arith.constant 0 : index
    %24 = vector.load %arg7[%c0_10, %c0_11] : memref<1x13xf32, #tpu.memory_space<vmem>>, vector<1x13xf32>
    %25 = arith.extui %16 : vector<128x13xi1> to vector<128x13xi32>
    %26 = arith.sitofp %25 : vector<128x13xi32> to vector<128x13xf32>
    %cst_12 = arith.constant dense<0.000000e+00> : vector<13xf32>
    %27 = vector.multi_reduction <add>, %26, %cst_12 [0] : vector<128x13xf32> to vector<13xf32>
    %28 = vector.shape_cast %27 : vector<13xf32> to vector<1x13xf32>
    %29 = arith.addf %24, %28 : vector<1x13xf32>
    %c0_13 = arith.constant 0 : index
    %c0_14 = arith.constant 0 : index
    %30 = vector.load %arg7[%c0_13, %c0_14] : memref<1x13xf32, #tpu.memory_space<vmem>>, vector<1x13xf32>
    tpu.vector_store %arg7[%c0_13, %c0_14], %29 {strides = array<i32>} : memref<1x13xf32, #tpu.memory_space<vmem>>, vector<1x13xf32>,
    %c0_i32_15 = arith.constant 0 : i32
    %31 = arith.cmpi eq, %arg1, %c0_i32_15 : i32
    %32 = arith.extui %31 : i1 to i32
    %c0_i32_16 = arith.constant 0 : i32
    %33 = arith.cmpi ne, %32, %c0_i32_16 : i32
    scf.if %33 {
      %c0_17 = arith.constant 0 : index
      %c0_18 = arith.constant 0 : index
      %34 = vector.load %arg6[%c0_17, %c0_18] : memref<1x13xf32, #tpu.memory_space<vmem>>, vector<1x13xf32>
      %c0_19 = arith.constant 0 : index
      %c0_20 = arith.constant 0 : index
      %c0_21 = arith.constant 0 : index
      %35 = vector.load %arg4[%c0_19, %c0_20, %c0_21] : memref<1x1x13xf32, #tpu.memory_space<vmem>>, vector<1x1x13xf32>
      %36 = vector.shape_cast %35 : vector<1x1x13xf32> to vector<1x13xf32>
      %37 = vector.shape_cast %34 : vector<1x13xf32> to vector<1x1x13xf32>
      tpu.vector_store %arg4[%c0_19, %c0_20, %c0_21], %37 {strides = array<i32>} : memref<1x1x13xf32, #tpu.memory_space<vmem>>, vector<1x1x13xf32>,
      %c0_22 = arith.constant 0 : index
      %c0_23 = arith.constant 0 : index
      %38 = vector.load %arg7[%c0_22, %c0_23] : memref<1x13xf32, #tpu.memory_space<vmem>>, vector<1x13xf32>
      %c0_24 = arith.constant 0 : index
      %c0_25 = arith.constant 0 : index
      %c0_26 = arith.constant 0 : index
      %39 = vector.load %arg5[%c0_24, %c0_25, %c0_26] : memref<1x1x13xf32, #tpu.memory_space<vmem>>, vector<1x1x13xf32>
      %40 = vector.shape_cast %39 : vector<1x1x13xf32> to vector<1x13xf32>
      %41 = vector.shape_cast %38 : vector<1x13xf32> to vector<1x1x13xf32>
      tpu.vector_store %arg5[%c0_24, %c0_25, %c0_26], %41 {strides = array<i32>} : memref<1x1x13xf32, #tpu.memory_space<vmem>>, vector<1x1x13xf32>,
    } else {
    }
    return
  }
  func.func @transform_0(%arg0: i32, %arg1: i32) -> (i32, i32) {
    %c1_i32 = arith.constant 1 : i32
    %0 = arith.muli %arg0, %c1_i32 : i32
    %1 = arith.addi %0, %arg1 : i32
    %c0_i32 = arith.constant 0 : i32
    %2 = arith.minsi %1, %c0_i32 : i32
    %c0_i32_0 = arith.constant 0 : i32
    %c0_i32_1 = arith.constant 0 : i32
    return %2, %c0_i32_0 : i32, i32
  }
  func.func @transform_1(%arg0: i32, %arg1: i32) -> (i32, i32) {
    %c1_i32 = arith.constant 1 : i32
    %0 = arith.muli %arg0, %c1_i32 : i32
    %1 = arith.addi %0, %arg1 : i32
    %c0_i32 = arith.constant 0 : i32
    %2 = arith.minsi %1, %c0_i32 : i32
    %c0_i32_0 = arith.constant 0 : i32
    %c0_i32_1 = arith.constant 0 : i32
    return %2, %c0_i32_0 : i32, i32
  }
  func.func @transform_2(%arg0: i32, %arg1: i32) -> (i32, i32, i32) {
    %c0_i32 = arith.constant 0 : i32
    %c0_i32_0 = arith.constant 0 : i32
    %c0_i32_1 = arith.constant 0 : i32
    return %arg0, %c0_i32, %c0_i32_0 : i32, i32, i32
  }
  func.func @transform_3(%arg0: i32, %arg1: i32) -> (i32, i32, i32) {
    %c0_i32 = arith.constant 0 : i32
    %c0_i32_0 = arith.constant 0 : i32
    %c0_i32_1 = arith.constant 0 : i32
    return %arg0, %c0_i32, %c0_i32_0 : i32, i32, i32
  }
}

</mosaic_0001>

<bundles_post_ra>
// kernel: tpu_custom_call.1
= control target key start
LH: loop header
LB: loop body
LE: loop exit
PB: predicated region body
PF: predicated region fallthrough
CT: control target
= control target key end

     0   :  { %9 = vsyncpa [#allocation5], 0  ;;  %s1373_s0 = inlined_call_operand.vmem [shape: f32[128,13], index: 0, kind: input, shape index: {}]   ;;  %s1374_s1 = inlined_call_operand.vmem [shape: s32[128,1], index: 1, kind: input, shape index: {}]   ;;  %s1375_s2 = inlined_call_operand.hbm [shape: f32[2,1,13], index: 2, kind: output, shape index: {0}]   ;;  %s1376_s3 = inlined_call_operand.hbm [shape: f32[2,1,13], index: 3, kind: output, shape index: {1}]  }
   0x1   :  { %11 = vsyncpa [#allocation5 + $0x1], 0 }
   0x2   :  { %12 = vsyncpa [#allocation7], 0 }
   0x3   :  { %14 = vsyncpa [#allocation7 + $0x1], 0  ;;  %s929_s12 = smov 0   ;;  %s931_s13 = smov 0  }
   0x4   :  { %s933_s14 = smov 0   ;;  %s935_s15 = smov 0  }
   0x5   :  { %s937_s16 = smov 0   ;;  %s939_s17 = smov 0  }
   0x6 LB: > { %s699_s18 = sadd.s32 4294967295, %s903_s17   ;;  %s700_s19 = sadd.s32 4294967294, %s903_s17   ;;  %s903_s17 = sphi %s939_s17, %s20_s17   ;;  %s899_s16 = sphi %s937_s16, %s1411_s16   ;;  %s895_s15 = sphi %s935_s15, %s1410_s15   ;;  %s891_s14 = sphi %s933_s14, %s1409_s14   ;;  %s887_s13 = sphi %s931_s13, %s1408_s13   ;;  %s883_s12 = sphi %s929_s12, %s1407_s12  }
   0x7   : > { %s32_s20 = sadd.s32 1, %s899_s16  ;;  %s103_s21 = sadd.s32 1, %s891_s14 }
   0x8   : > { %p34_p0 = scmp.ge.s32.totalorder %s32_s20, 2  ;;  %p113_p1 = scmp.ne.s32.totalorder %s891_s14, %s887_s13 }
   0x9   : > { %p114_p2 = scmp.eq.s32.totalorder %s699_s18, 1  ;;  %p119_p3 = scmp.ne.s32.totalorder %s887_s13, %s883_s12 }
   0xa   : > { %s1413_s20 = smov (%p34_p0, %s32_s20), 0  ;;  %p120_p5 = scmp.eq.s32.totalorder %s700_s19, 1 }
   0xb   : > { %p969_p4 = por %p114_p2, %p113_p1  ;;  %s100_s23 = ssub.s32 %s899_s16, %s1413_s20 }
   0xc   : > { %p703_p6 = scmp.ge.s32.totalorder %s903_s17, 1  ;;  %p101_p7 = scmp.eq.s32.totalorder %s100_s23, 0 }
   0xd   : > { %p976_p8 = por %p120_p5, %p119_p3  ;;  %p194_p9 = scmp.lt.s32.totalorder %s903_s17, 3 }
   0xe   : > { %s982_s25 = scalar_select %p101_p7, %s891_s14, %s103_s21  }
   0xf   : > { %p195_p10 = pnand %p703_p6, %p194_p9 }
  0x10   : > { %p233_p11 = scmp.lt.s32.totalorder (!%p195_p10), %s895_s15, 0  ;;  %v905_v0 = vmov (!%p195_p10), 0   ;;  %vm260_vm0 = vcmask (!%p195_p10), 98304   ;;  %v906_v17 = vmov (!%p195_p10), 0.0   ;;  %v297_v18 = vlaneseq (!%p195_p10)  ;;  %s708_s5 = sshll.u32 (!%p195_p10), %s895_s15, 7 }
  0x11   : > { %198 = sbr.rel (%p195_p10) target bundleno = 259 (0x103), region = 28  ;;  %792 = vset.pattern.permute.xlu1 (!%p195_p10), %v905_v0  ;;  %791 = vset.pattern.permute.xlu0 (!%p195_p10), %v905_v0  ;;  %261 = vst.msk [vmem:[#allocation2] sm:$0x1] (!%p195_p10), %vm260_vm0, %v906_v17  ;;  %262 = vst.msk [vmem:[#allocation3] sm:$0x1] (!%p195_p10), %vm260_vm0, %v906_v17  ;;  %v1002_v21 = vstv (!%p195_p10), %s708_s5  ;;  %vm446_vm5 = vcmask (!%p195_p10), 105472  }
  0x12   : > { %v999_v19 = vshrl.u32 (!%p195_p10), %v297_v18, 7  ;;  %v1011_v28 = vand.u32 (!%p195_p10), 127, %v297_v18  ;;  %s1284_s9 = sand.u32 (!%p195_p10), 1, %s887_s13   ;;  %s725_s10 = sshll.u32 (!%p195_p10), %s895_s15, 4 }
  0x13   : > { %s225_s11 = scalar_lea.vmem (!%p195_p10), [#allocation4], %s1284_s9  ;;  %s231_s19 = scalar_lea.vmem (!%p195_p10), [#allocation6], %s1284_s9 }
  0x14   : > { %v300_v20 = vadd.s32 (!%p195_p10), 16, %v999_v19  ;;  %v301_v22 = vadd.s32 (!%p195_p10), 24, %v999_v19  ;;  %v299_v23 = vadd.s32 (!%p195_p10), 8, %v999_v19  ;;  %v303_v24 = vadd.s32 (!%p195_p10), 40, %v999_v19  ;;  %s583_s18 = sshll.u32 (!%p195_p10), %s225_s11, 4  ;;  %s596_s21 = sshll.u32 (!%p195_p10), %s231_s19, 4  ;;  %s1296_s18 = int_to_ptr.vmem [resolvable:$true] %s583_s18  ;;  %s1303_s21 = int_to_ptr.vmem [resolvable:$true] %s596_s21 }
  0x15   : > { %v315_v26 = vadd.s32 (!%p195_p10), %v1002_v21, %v999_v19  ;;  %v302_v27 = vadd.s32 (!%p195_p10), 32, %v999_v19  ;;  %v305_v29 = vadd.s32 (!%p195_p10), 56, %v999_v19  ;;  %v304_v30 = vadd.s32 (!%p195_p10), 48, %v999_v19  ;;  %s567_s30 = scalar_lea.sflag (!%p195_p10), [#allocation5], %s1284_s9  ;;  %s907_s5 = smov (!%p195_p10), [#allocation4]  }
  0x16   : > { %v317_v25 = vadd.s32 (!%p195_p10), %v1002_v21, %v300_v20  ;;  %v318_v31 = vadd.s32 (!%p195_p10), %v1002_v21, %v301_v22  ;;  %v316_v32 = vadd.s32 (!%p195_p10), %v1002_v21, %v299_v23  ;;  %v320_v33 = vadd.s32 (!%p195_p10), %v1002_v21, %v303_v24  ;;  %s797_s6 = sshll.u32 (!%p195_p10), %s907_s5, 4  ;;  %s798_s6 = int_to_ptr.vmem [resolvable:$false] %s797_s6 }
  0x17   : > { %v307_v34 = vadd.s32 (!%p195_p10), 72, %v999_v19  ;;  %vm397_vm2 = vcmp.lt.s32.totalorder (!%p195_p10), %v315_v26, 128  ;;  %v319_v37 = vadd.s32 (!%p195_p10), %v1002_v21, %v302_v27  ;;  %v306_v38 = vadd.s32 (!%p195_p10), 64, %v999_v19  ;;  %s799_s7 = scalar_lea.vmem (!%p195_p10), %s798_s6, 32  ;;  %p800_p2 = scmp.lt.s32.totalorder (!%p195_p10), %s1296_s18, %s798_s6 }
  0x18   : > { %s234_s26 = scalar_select %p233_p11, %s895_s15, 0  ;;  %vm399_vm1 = vcmp.lt.s32.totalorder %v317_v25, 128  ;;  %v1032_v40 = vadd.s32 %v1002_v21, %v305_v29  ;;  %v1035_v41 = vadd.s32 %v1002_v21, %v304_v30  ;;  %v309_v42 = vadd.s32 88, %v999_v19 }
  0x19   : > { %v308_v43 = vadd.s32 80, %v999_v19  ;;  %vm400_vm7 = vcmp.lt.s32.totalorder %v318_v31, 128  ;;  %vm398_vm8 = vcmp.lt.s32.totalorder %v316_v32, 128  ;;  %vm402_vm9 = vcmp.lt.s32.totalorder %v320_v33, 128  ;;  %s1301_s15 = scalar_lea.hbm %s1376_s3, %s725_s10 }
  0x1a   : > { %s704_s27 = sshll.u32 %s234_s26, 4  ;;  %v1044_v45 = vadd.s32 %v1002_v21, %v307_v34  ;;  %vm401_vm11 = vcmp.lt.s32.totalorder %v319_v37, 128  ;;  %v1058_v52 = vadd.s32 %v1002_v21, %v306_v38  ;;  %vm404_vm14 = vcmp.lt.s32.totalorder %v1032_v40, 128 }
  0x1b   : > { %p236_p12 = scmp.lt.s32.totalorder %s704_s27, 15  ;;  %vm403_vm15 = vcmp.lt.s32.totalorder %v1035_v41, 128  ;;  %v1072_v56 = vadd.s32 %v1002_v21, %v309_v42  ;;  %v1075_v57 = vadd.s32 %v1002_v21, %v308_v43  ;;  %v311_v58 = vadd.s32 104, %v999_v19 }
  0x1c   : > { %v310_v59 = vadd.s32 96, %v999_v19 }
  0x1d   : > { %s1415_s27 = smov (!%p236_p12, %s704_s27), 15 }
  0x1e   : > { %s705_s28 = sshll.u32 %s1415_s27, 3  ;;  %s1294_s27 = scalar_lea.hbm %s1375_s2, %s725_s10 }
  0x1f   : > { %s251_s4 = scalar_lea.vmem %s1374_s1, %s705_s28  ;;  %s1020_s8 = scalar_lea.vmem %s1373_s0, %s705_s28 }
  0x20   : > { %v281_v1 = vld [vmem:[%s251_s4 + $0x10] sm:$0xff]  ;;  %v279_v2 = vld [vmem:[%s251_s4] sm:$0xff]  ;;  %v282_v3 = vld [vmem:[%s251_s4 + $0x18] sm:$0xff] }
  0x21   : > { %340 = vperm.xlu1 %792, %v281_v1   ;;  %334 = vperm.xlu0 %791, %v279_v2   ;;  %v280_v4 = vld [vmem:[%s251_s4 + $0x8] sm:$0xff]  ;;  %v283_v6 = vld [vmem:[%s251_s4 + $0x20] sm:$0xff]  ;;  %v286_v7 = vld [vmem:[%s251_s4 + $0x38] sm:$0xff] }
  0x22   : > { %v284_v5 = vld [vmem:[%s251_s4 + $0x28] sm:$0xff]  ;;  %v285_v8 = vld [vmem:[%s251_s4 + $0x30] sm:$0xff]  ;;  %v287_v10 = vld [vmem:[%s251_s4 + $0x40] sm:$0xff] }
  0x23   : > { %v288_v9 = vld [vmem:[%s251_s4 + $0x48] sm:$0xff]  ;;  %v290_v11 = vld [vmem:[%s251_s4 + $0x58] sm:$0xff]  ;;  %v289_v12 = vld [vmem:[%s251_s4 + $0x50] sm:$0xff] }
  0x24   : > { %v292_v13 = vld [vmem:[%s251_s4 + $0x68] sm:$0xff]  ;;  %v291_v14 = vld [vmem:[%s251_s4 + $0x60] sm:$0xff]  ;;  %v294_v15 = vld [vmem:[%s251_s4 + $0x78] sm:$0xff] }
  0x25   : > { %343 = vperm.xlu1 %792, %v282_v3   ;;  %337 = vperm.xlu0 %791, %v280_v4   ;;  %v293_v16 = vld [vmem:[%s251_s4 + $0x70] sm:$0xff]  ;;  %v263_v39 = vld [vmem:[%s1020_s8] sm:$0xff]  ;;  %v266_v53 = vld [vmem:[%s1020_s8 + $0x18] sm:$0xff]  ;;  %s793_s4 = scalar_lea.vmem %s1296_s18, 16 }
  0x26   : > { %v265_v46 = vld [vmem:[%s1020_s8 + $0x10] sm:$0xff]  ;;  %v264_v54 = vld [vmem:[%s1020_s8 + $0x8] sm:$0xff]  ;;  %v270_v32 = vld [vmem:[%s1020_s8 + $0x38] sm:$0xff]  ;;  %p794_p13 = scmp.ne.s32.totalorder %s1296_s18, %s793_s4  ;;  %p801_p3 = scmp.lt.s32.totalorder %s799_s7, %s793_s4 }
  0x28   : > { %p795_p0 = pnand %p794_p13, %p969_p4  ;;  %p802_p5 = por %p801_p3, %p800_p2 }
  0x29   : > { %349 = vperm.xlu1 %792, %v284_v5   ;;  %346 = vperm.xlu0 %791, %v283_v6  }
  0x2a   : > { %p796_p1 = pneg %p795_p0 }
  0x2c   : > { %p803_p6 = pnand %p802_p5, %p796_p1 }
  0x2d   : > { %355 = vperm.xlu1 %792, %v286_v7   ;;  %352 = vperm.xlu0 %791, %v285_v8   ;;  %v268_v8 = vld [vmem:[%s1020_s8 + $0x28] sm:$0xff] }
  0x31   : > { %361 = vperm.xlu1 %792, %v288_v9   ;;  %358 = vperm.xlu0 %791, %v287_v10  }
  0x35   : > { %367 = vperm.xlu1 %792, %v290_v11   ;;  %364 = vperm.xlu0 %791, %v289_v12   ;;  %v267_v12 = vld [vmem:[%s1020_s8 + $0x20] sm:$0xff]  ;;  %v273_v11 = vld [vmem:[%s1020_s8 + $0x50] sm:$0xff] }
  0x39   : > { %373 = vperm.xlu1 %792, %v292_v13   ;;  %370 = vperm.xlu0 %791, %v291_v14   ;;  %v1107_v13 = vadd.s32 %v1002_v21, %v311_v58  ;;  %v1110_v14 = vadd.s32 %v1002_v21, %v310_v59  ;;  %v271_v58 = vld [vmem:[%s1020_s8 + $0x40] sm:$0xff]  ;;  %v313_v59 = vadd.s32 120, %v999_v19 }
  0x3d   : > { %379 = vperm.xlu1 %792, %v294_v15   ;;  %376 = vperm.xlu0 %791, %v293_v16  }
  0xa0   : > { %v341_v35 = vpop.permute.xlu1 %340  ;;  %v335_v36 = vpop.permute.xlu0 %334 }
  0xa1   : > { %vm383_vm3 = vcmp.eq.s32.totalorder %v1011_v28, %v341_v35  ;;  %vm381_vm4 = vcmp.eq.s32.totalorder %v1011_v28, %v335_v36  ;;  %v269_v36 = vld [vmem:[%s1020_s8 + $0x30] sm:$0xff] }
  0xa2   : > { %vm1039_vm6 = vmand %vm381_vm4, %vm397_vm2  ;;  %vm405_vm4 = vcmp.lt.s32.totalorder %v1058_v52, 128 }
  0xa3   : > { %vm1048_vm10 = vmand %vm383_vm3, %vm399_vm1  ;;  %v430_v48 = vsel %vm1039_vm6, %v263_v39, 0.0  ;;  %v709_v49 = vsel %vm1039_vm6, 1.0, %v906_v17  ;;  %vm406_vm3 = vcmp.lt.s32.totalorder %v1044_v45, 128 }
  0xa4   : > { %v344_v50 = vpop.permute.xlu1 %343  ;;  %v338_v51 = vpop.permute.xlu0 %337  ;;  %v432_v60 = vsel %vm1048_vm10, %v265_v46, 0.0  ;;  %v711_v61 = vsel %vm1048_vm10, 1.0, %v906_v17  ;;  %v447_v62 = vsel %vm446_vm5, %v430_v48, 0.0  ;;  %v520_v63 = vsel %vm446_vm5, %v709_v49, 0.0 }
  0xa5   : > { %vm384_vm12 = vcmp.eq.s32.totalorder %v1011_v28, %v344_v50  ;;  %vm382_vm13 = vcmp.eq.s32.totalorder %v1011_v28, %v338_v51  ;;  %v450_v15 = vsel %vm446_vm5, %v432_v60, 0.0  ;;  %v523_v16 = vsel %vm446_vm5, %v711_v61, 0.0  ;;  %v272_v51 = vld [vmem:[%s1020_s8 + $0x48] sm:$0xff] }
  0xa6   : > { %vm1067_vm1 = vmand %vm384_vm12, %vm400_vm7  ;;  %v312_v60 = vadd.s32 112, %v999_v19 }
  0xa7   : > { %vm414_vm2 = vmand %vm382_vm13, %vm398_vm8  ;;  %v433_v0 = vsel %vm1067_vm1, %v266_v53, 0.0  ;;  %v712_v1 = vsel %vm1067_vm1, 1.0, %v906_v17  ;;  %vm408_vm13 = vcmp.lt.s32.totalorder %v1072_v56, 128  ;;  %vm407_vm1 = vcmp.lt.s32.totalorder %v1075_v57, 128 }
  0xa8   : > { %v431_v2 = vsel %vm414_vm2, %v264_v54, 0.0  ;;  %v710_v3 = vsel %vm414_vm2, 1.0, %v906_v17  ;;  %v350_v4 = vpop.permute.xlu1 %349  ;;  %v347_v5 = vpop.permute.xlu0 %346  ;;  %v452_v18 = vsel %vm446_vm5, %v433_v0, 0.0  ;;  %v525_v20 = vsel %vm446_vm5, %v712_v1, 0.0 }
  0xa9   : > { %v448_v6 = vsel %vm446_vm5, %v431_v2, 0.0  ;;  %v521_v7 = vsel %vm446_vm5, %v710_v3, 0.0  ;;  %vm386_vm6 = vcmp.eq.s32.totalorder %v1011_v28, %v350_v4  ;;  %vm385_vm7 = vcmp.eq.s32.totalorder %v1011_v28, %v347_v5 }
  0xaa   : > { %v449_v9 = vadd.f32 %v448_v6, %v447_v62  ;;  %v522_v10 = vadd.f32 %v521_v7, %v520_v63  ;;  %vm1101_vm8 = vmand %vm386_vm6, %vm402_vm9  ;;  %vm410_vm2 = vcmp.lt.s32.totalorder %v1107_v13, 128  ;;  %vm409_vm6 = vcmp.lt.s32.totalorder %v1110_v14, 128  ;;  %v274_v7 = vld [vmem:[%s1020_s8 + $0x58] sm:$0xff] }
  0xab   : > { %vm1117_vm9 = vmand %vm385_vm7, %vm401_vm11  ;;  %v435_v25 = vsel %vm1101_vm8, %v268_v8, 0.0  ;;  %v714_v26 = vsel %vm1101_vm8, 1.0, %v906_v17 }
  0xac   : > { %v451_v23 = vadd.f32 %v450_v15, %v449_v9  ;;  %v524_v24 = vadd.f32 %v523_v16, %v522_v10  ;;  %v356_v27 = vpop.permute.xlu1 %355  ;;  %v353_v29 = vpop.permute.xlu0 %352  ;;  %v434_v30 = vsel %vm1117_vm9, %v267_v12, 0.0  ;;  %v713_v31 = vsel %vm1117_vm9, 1.0, %v906_v17 }
  0xad   : > { %vm388_vm10 = vcmp.eq.s32.totalorder %v1011_v28, %v356_v27  ;;  %vm387_vm11 = vcmp.eq.s32.totalorder %v1011_v28, %v353_v29  ;;  %v456_v37 = vsel %vm446_vm5, %v435_v25, 0.0  ;;  %v529_v38 = vsel %vm446_vm5, %v714_v26, 0.0 }
  0xae   : > { %v526_v33 = vadd.f32 %v525_v20, %v524_v24  ;;  %v453_v34 = vadd.f32 %v452_v18, %v451_v23  ;;  %vm1136_vm12 = vmand %vm388_vm10, %vm404_vm14  ;;  %v454_v39 = vsel %vm446_vm5, %v434_v30, 0.0  ;;  %v527_v42 = vsel %vm446_vm5, %v713_v31, 0.0 }
  0xaf   : > { %vm1149_vm14 = vmand %vm387_vm11, %vm403_vm15  ;;  %v437_v46 = vsel %vm1136_vm12, %v270_v32, 0.0  ;;  %v716_v47 = vsel %vm1136_vm12, 1.0, %v906_v17  ;;  %v330_v12 = vadd.s32 %v1002_v21, %v313_v59  ;;  %v329_v15 = vadd.s32 %v1002_v21, %v312_v60 }
  0xb0   : > { %v455_v43 = vadd.f32 %v454_v39, %v453_v34  ;;  %v528_v44 = vadd.f32 %v527_v42, %v526_v33  ;;  %v362_v48 = vpop.permute.xlu1 %361  ;;  %v359_v49 = vpop.permute.xlu0 %358  ;;  %v436_v41 = vsel %vm1149_vm14, %v269_v36, 0.0  ;;  %v715_v50 = vsel %vm1149_vm14, 1.0, %v906_v17  ;;  %v275_v33 = vld [vmem:[%s1020_s8 + $0x60] sm:$0xff]  ;;  %v276_v36 = vld [vmem:[%s1020_s8 + $0x68] sm:$0xff] }
  0xb1   : > { %vm390_vm15 = vcmp.eq.s32.totalorder %v1011_v28, %v362_v48  ;;  %vm389_vm7 = vcmp.eq.s32.totalorder %v1011_v28, %v359_v49  ;;  %v460_v61 = vsel %vm446_vm5, %v437_v46, 0.0  ;;  %v533_v62 = vsel %vm446_vm5, %v716_v47, 0.0 }
  0xb2   : > { %v530_v53 = vadd.f32 %v529_v38, %v528_v44  ;;  %v457_v54 = vadd.f32 %v456_v37, %v455_v43  ;;  %vm1170_vm8 = vmand %vm390_vm15, %vm406_vm3  ;;  %v458_v63 = vsel %vm446_vm5, %v436_v41, 0.0  ;;  %v531_v0 = vsel %vm446_vm5, %v715_v50, 0.0  ;;  %v277_v50 = vld [vmem:[%s1020_s8 + $0x70] sm:$0xff] }
  0xb3   : > { %vm1183_vm3 = vmand %vm389_vm7, %vm405_vm4  ;;  %v439_v19 = vsel %vm1170_vm8, %v272_v51, 0.0  ;;  %v718_v3 = vsel %vm1170_vm8, 1.0, %v906_v17  ;;  %vm412_vm15 = vcmp.lt.s32.totalorder %v330_v12, 128  ;;  %vm411_vm7 = vcmp.lt.s32.totalorder %v329_v15, 128 }
  0xb4   : > { %v459_v1 = vadd.f32 %v458_v63, %v457_v54  ;;  %v532_v2 = vadd.f32 %v531_v0, %v530_v53  ;;  %v368_v4 = vpop.permute.xlu1 %367  ;;  %v365_v5 = vpop.permute.xlu0 %364  ;;  %v438_v6 = vsel %vm1183_vm3, %v271_v58, 0.0  ;;  %v717_v52 = vsel %vm1183_vm3, 1.0, %v906_v17 }
  0xb5   : > { %vm392_vm4 = vcmp.eq.s32.totalorder %v1011_v28, %v368_v4  ;;  %vm391_vm9 = vcmp.eq.s32.totalorder %v1011_v28, %v365_v5  ;;  %v464_v16 = vsel %vm446_vm5, %v439_v19, 0.0  ;;  %v537_v18 = vsel %vm446_vm5, %v718_v3, 0.0 }
  0xb6   : > { %v534_v8 = vadd.f32 %v533_v62, %v532_v2  ;;  %v461_v9 = vadd.f32 %v460_v61, %v459_v1  ;;  %vm1202_vm10 = vmand %vm392_vm4, %vm408_vm13  ;;  %v462_v20 = vsel %vm446_vm5, %v438_v6, 0.0  ;;  %v535_v22 = vsel %vm446_vm5, %v717_v52, 0.0 }
  0xb7   : > { %vm1215_vm11 = vmand %vm391_vm9, %vm407_vm1  ;;  %v441_v21 = vsel %vm1202_vm10, %v274_v7, 0.0  ;;  %v720_v25 = vsel %vm1202_vm10, 1.0, %v906_v17 }
  0xb8   : > { %v463_v23 = vadd.f32 %v462_v20, %v461_v9  ;;  %v536_v24 = vadd.f32 %v535_v22, %v534_v8  ;;  %v374_v26 = vpop.permute.xlu1 %373  ;;  %v371_v27 = vpop.permute.xlu0 %370  ;;  %v440_v29 = vsel %vm1215_vm11, %v273_v11, 0.0  ;;  %v719_v57 = vsel %vm1215_vm11, 1.0, %v906_v17  ;;  %v429_v20 = vld [vmem:[#allocation2] sm:$0x1]  ;;  %v487_v22 = vld [vmem:[#allocation3] sm:$0x1] }
  0xb9   : > { %vm394_vm12 = vcmp.eq.s32.totalorder %v1011_v28, %v374_v26  ;;  %vm393_vm13 = vcmp.eq.s32.totalorder %v1011_v28, %v371_v27  ;;  %v466_v34 = vsel %vm446_vm5, %v440_v29, 0.0  ;;  %v539_v35 = vsel %vm446_vm5, %v719_v57, 0.0 }
  0xba   : > { %v538_v30 = vadd.f32 %v537_v18, %v536_v24  ;;  %v465_v31 = vadd.f32 %v464_v16, %v463_v23  ;;  %vm1233_vm1 = vmand %vm394_vm12, %vm410_vm2  ;;  %v468_v13 = vsel %vm446_vm5, %v441_v21, 0.0  ;;  %v541_v38 = vsel %vm446_vm5, %v720_v25, 0.0 }
  0xbb   : > { %vm1243_vm14 = vmand %vm393_vm13, %vm409_vm6  ;;  %v443_v46 = vsel %vm1233_vm1, %v276_v36, 0.0  ;;  %v722_v47 = vsel %vm1233_vm1, 1.0, %v906_v17 }
  0xbc   : > { %v467_v39 = vadd.f32 %v466_v34, %v465_v31  ;;  %v540_v42 = vadd.f32 %v539_v35, %v538_v30  ;;  %v380_v40 = vpop.permute.xlu1 %379  ;;  %v377_v43 = vpop.permute.xlu0 %376  ;;  %v442_v44 = vsel %vm1243_vm14, %v275_v33, 0.0  ;;  %v721_v14 = vsel %vm1243_vm14, 1.0, %v906_v17 }
  0xbd   : > { %vm396_vm2 = vcmp.eq.s32.totalorder %v1011_v28, %v380_v40  ;;  %vm395_vm6 = vcmp.eq.s32.totalorder %v1011_v28, %v377_v43  ;;  %v470_v51 = vsel %vm446_vm5, %v442_v44, 0.0  ;;  %v543_v53 = vsel %vm446_vm5, %v721_v14, 0.0  ;;  %v278_v28 = vld [vmem:[%s1020_s8 + $0x78] sm:$0xff] }
  0xbe   : > { %v542_v48 = vadd.f32 %v541_v38, %v540_v42  ;;  %v469_v49 = vadd.f32 %v468_v13, %v467_v39  ;;  %vm1262_vm8 = vmand %vm396_vm2, %vm412_vm15  ;;  %v472_v58 = vsel %vm446_vm5, %v443_v46, 0.0  ;;  %v545_v59 = vsel %vm446_vm5, %v722_v47, 0.0 }
  0xbf   : > { %vm427_vm3 = vmand %vm395_vm6, %vm411_vm7  ;;  %v445_v62 = vsel %vm1262_vm8, %v278_v28, 0.0  ;;  %v724_v63 = vsel %vm1262_vm8, 1.0, %v906_v17 }
  0xc0   : > { %v471_v54 = vadd.f32 %v470_v51, %v469_v49  ;;  %v544_v55 = vadd.f32 %v543_v53, %v542_v48  ;;  %v444_v60 = vsel %vm427_vm3, %v277_v50, 0.0  ;;  %v723_v61 = vsel %vm427_vm3, 1.0, %v906_v17 }
  0xc1   : > { %v474_v1 = vsel %vm446_vm5, %v444_v60, 0.0  ;;  %v547_v2 = vsel %vm446_vm5, %v723_v61, 0.0  ;;  %v476_v4 = vsel %vm446_vm5, %v445_v62, 0.0  ;;  %v549_v5 = vsel %vm446_vm5, %v724_v63, 0.0 }
  0xc2   : > { %v546_v0 = vadd.f32 %v545_v59, %v544_v55  ;;  %v473_v45 = vadd.f32 %v472_v58, %v471_v54 }
  0xc4   : > { %v475_v19 = vadd.f32 %v474_v1, %v473_v45  ;;  %v548_v3 = vadd.f32 %v547_v2, %v546_v0 }
  0xc6   : > { %v477_v6 = vadd.f32 %v476_v4, %v475_v19  ;;  %v550_v52 = vadd.f32 %v549_v5, %v548_v3 }
  0xc8   : > { %v478_v7 = vrot.slane %v477_v6, 4  ;;  %v551_v8 = vrot.slane %v550_v52, 4 }
  0xca   : > { %v479_v9 = vadd.f32 %v478_v7, %v477_v6  ;;  %v552_v10 = vadd.f32 %v551_v8, %v550_v52 }
  0xcc   : > { %v480_v17 = vrot.slane %v479_v9, 2  ;;  %v553_v11 = vrot.slane %v552_v10, 2 }
  0xce   : > { %v481_v12 = vadd.f32 %v480_v17, %v479_v9  ;;  %v554_v15 = vadd.f32 %v553_v11, %v552_v10 }
  0xd0   : > { %v482_v16 = vrot.slane %v481_v12, 1  ;;  %v555_v18 = vrot.slane %v554_v15, 1 }
  0xd2   : > { %v483_v56 = vadd.f32 %v482_v16, %v481_v12  ;;  %v556_v23 = vadd.f32 %v555_v18, %v554_v15 }
  0xd4   : > { %v484_v24 = vadd.f32 %v483_v56, %v429_v20  ;;  %v557_v21 = vadd.f32 %v556_v23, %v487_v22 }
  0xd6   : > { %486 = vst.msk [vmem:[#allocation2] sm:$0x1] %vm260_vm0, %v484_v24  ;;  %558 = vst.msk [vmem:[#allocation3] sm:$0x1] %vm260_vm0, %v557_v21 }
  0xdd   : > { %v562_v25 = vld [vmem:[#allocation2] sm:$0x1]  ;;  %v564_v26 = vld [vmem:[#allocation3] sm:$0x1] }
  0xde   : > { %563 = vst.msk [vmem:[%s225_s11] sm:$0x1] %vm260_vm0, %v562_v25  ;;  %565 = vst.msk [vmem:[%s231_s19] sm:$0x1] %vm260_vm0, %v564_v26 }
  0xdf   : > { %806 = shalt.err (!%p803_p6)
}
  0xe0   : > { %s807_s8 = scalar_lea.hbm %s1294_s27, 16  ;;  %s811_s19 = scalar_lea.hbm %s1375_s2, 32 }
  0xe1   : > { %p808_p7 = scmp.ne.s32.totalorder %s1294_s27, %s807_s8  ;;  %p812_p11 = scmp.lt.u32.totalorder %s1294_s27, %s1375_s2 }
  0xe2   : > { %p813_p12 = scmp.lt.u32.totalorder %s811_s19, %s807_s8  ;;  %p815_p0 = scmp.lt.u32.totalorder %s807_s8, %s1294_s27 }
  0xe3   : > { %p809_p9 = pnand %p808_p7, %p969_p4 }
  0xe4   : > { %p814_p13 = por %p813_p12, %p812_p11 }
  0xe5   : > { %p810_p10 = pneg %p809_p9 }
  0xe6   : > { %p816_p1 = por %p815_p0, %p814_p13 }
  0xe8   : > { %p817_p2 = pnand %p816_p1, %p810_p10 }
  0xea   : > { %820 = shalt.err (!%p817_p2)
}
  0xeb   : > { %729 = dma.vmem_to_hbm [thread:$0]  (%p969_p4), %s1296_s18, 16, %s1294_s27, %s567_s30  }
  0xec   : > { %s571_s28 = scalar_lea.sflag [#allocation7], %s1284_s9  ;;  %s821_s29 = scalar_lea.vmem %s1303_s21, 16 }
  0xed   : > { %p822_p3 = scmp.ne.s32.totalorder %s1303_s21, %s821_s29  ;;  %s908_s4 = smov [#allocation6]  }
  0xee   : > { %s825_s5 = sshll.u32 %s908_s4, 4  ;;  %s826_s5 = int_to_ptr.vmem [resolvable:$false] %s825_s5 }
  0xef   : > { %p823_p5 = pnand %p822_p3, %p969_p4  ;;  %s827_s6 = scalar_lea.vmem %s826_s5, 32 }
  0xf0   : > { %p828_p7 = scmp.lt.s32.totalorder %s1303_s21, %s826_s5  ;;  %p829_p9 = scmp.lt.s32.totalorder %s827_s6, %s821_s29 }
  0xf1   : > { %p824_p6 = pneg %p823_p5 }
  0xf2   : > { %p830_p10 = por %p829_p9, %p828_p7 }
  0xf4   : > { %p831_p11 = pnand %p830_p10, %p824_p6 }
  0xf6   : > { %834 = shalt.err (!%p831_p11)
}
  0xf7   : > { %s835_s9 = scalar_lea.hbm %s1301_s15, 16  ;;  %s839_s30 = scalar_lea.hbm %s1376_s3, 32 }
  0xf8   : > { %p836_p12 = scmp.ne.s32.totalorder %s1301_s15, %s835_s9  ;;  %p840_p1 = scmp.lt.u32.totalorder %s1301_s15, %s1376_s3 }
  0xf9   : > { %p841_p2 = scmp.lt.u32.totalorder %s839_s30, %s835_s9  ;;  %p843_p5 = scmp.lt.u32.totalorder %s835_s9, %s1301_s15 }
  0xfa   : > { %p837_p13 = pnand %p836_p12, %p969_p4 }
  0xfb   : > { %p842_p3 = por %p841_p2, %p840_p1 }
  0xfc   : > { %p838_p0 = pneg %p837_p13 }
  0xfd   : > { %p844_p6 = por %p843_p5, %p842_p3 }
  0xff   : > { %p845_p7 = pnand %p844_p6, %p838_p0 }
 0x101   : > { %848 = shalt.err (!%p845_p7)
}
 0x102   : > { %730 = dma.vmem_to_hbm [thread:$0]  (%p969_p4), %s1303_s21, 16, %s1301_s15, %s571_s28  }
 0x103 PF: > { %p740_p9 = scmp.ge.s32.totalorder %s903_s17, 2  ;;  %s608_s10 = sand.u32 1, %s883_s12  }
 0x104   : > { %s609_s11 = scalar_lea.sflag [#allocation5], %s608_s10 }
 0x105   : > { %p734_p10 = pnand %p740_p9, %p976_p8 }
 0x107   : > { %874 = dma.done.wait (!%p734_p10), %s609_s11, 16  }
 0x108   : > { %876 = vsyncadd (!%p734_p10), %s609_s11, 4294967280  ;;  %s617_s19 = scalar_lea.sflag [#allocation7], %s608_s10 }
 0x109   : > { %878 = dma.done.wait (!%p734_p10), %s617_s19, 16  }
 0x10a   : > { %880 = vsyncadd (!%p734_p10), %s617_s19, 4294967280  ;;  %s20_s17 = sadd.s32 1, %s903_s17   ;;  %s1407_s12 = smov %s887_s13 }
 0x10b   : > { %p17_p11 = scmp.ge.s32.totalorder %s20_s17, 4   ;;  %s1408_s13 = smov %s891_s14 }
 0x10c   : > { %s1409_s14 = smov %s982_s25  ;;  %s1410_s15 = smov %s899_s16 }
 0x10d   : > { %s1411_s16 = smov %s1413_s20  ;;  %19 = sbr.rel (!%p17_p11) target bundleno = 6 (0x6), region = 91 }
 0x114   :  { %621 = vsyncpa [#allocation5], 1 }
 0x115   :  { %623 = vsyncpa [#allocation5 + $0x1], 1 }
 0x116   :  { %624 = vsyncpa [#allocation7], 1 }
 0x117   :  { %626 = vsyncpa [#allocation7 + $0x1], 1 }

</bundles_post_ra>
